<compile_context>
chip_gen: v5e
topology: v5e:2x2
jax: 0.10.0
libtpu: 0.0.40
codegen_flags: <defaults>
</compile_context>

<pallas_src>
import jax
import jax.numpy as jnp
from jax import lax
from jax.experimental import pallas as pl
from jax.experimental.pallas import tpu as pltpu


def fullnet_forward(x, params):
    """FullNet forward (hlayers=2, batchnorm=False, maxpool=0, eval mode).

    x: [N, Cin, H, W]; params are the torch tensors (OIHW convs, [out,in] linears).
    """
    w1, b1, w2, b2, w3, b3, wl1, bl1, wl2, bl2 = params
    N, Cin, H, W = x.shape
    C1 = w1.shape[0]
    C2 = w2.shape[0]
    C3 = w3.shape[0]
    fs = w2.shape[-1]
    W2 = W - fs + 1
    W3 = W2 - fs + 1
    CinH = Cin * H
    NW = N * W                    # flat width; column index p = n*W + w
    NW1 = NW - (fs - 1)           # flat width after conv2
    NW2 = NW1 - (fs - 1)          # flat width after conv3
    n_out = wl2.shape[0]
    NO = N * n_out
    f32 = jnp.float32
    hi = jax.lax.Precision.HIGHEST

    # ------------- wrapper-side layout plumbing / weight preprocessing -------------
    # x: [N, Cin, H, W] -> [Cin*H, N*W]   (row f = cin*H + h, column p = n*W + w)
    x_flat = jnp.transpose(x.astype(f32), (1, 2, 0, 3)).reshape(CinH, NW)

    # conv1 (H,1) kernel collapses to a dense [C1, Cin*H] matrix.
    w1_m = w1.reshape(C1, CinH).astype(f32)
    # conv2/conv3 taps stacked for a single im2col matmul:
    #   w2_m[o, k*C1 + i] = w2[o, i, 0, k]    (and similarly for w3_m)
    w2_m = jnp.transpose(w2.reshape(C2, C1, fs).astype(f32), (0, 2, 1)).reshape(C2, fs * C1)
    w3_m = jnp.transpose(w3.reshape(C3, C2, fs).astype(f32), (0, 2, 1)).reshape(C3, fs * C2)

    # Fuse Linear1 @ Linear2 (no activation in between).
    wcomb = jnp.dot(wl2.astype(f32), wl1.astype(f32), precision=hi).T          # [C3*W3, n_out]
    bcomb = jnp.dot(bl1.astype(f32), wl2.astype(f32).T, precision=hi) + bl2.astype(f32)
    wcomb3 = wcomb.reshape(C3, W3, n_out)
    # Per-channel "strided placement" final weights that consume the flat stride-W
    # conv3 output directly; cross-sample garbage columns get weight 0:
    #   wfin[c, n*W + w, n*n_out + o] = wcomb3[c, w, o]  for w < W3, else 0.
    wfin = jnp.zeros((C3, NW2, NO), f32)
    for n in range(N):
        wfin = wfin.at[:, n * W:n * W + W3, n * n_out:(n + 1) * n_out].set(wcomb3)
    bcomb_row = jnp.tile(bcomb.reshape(1, n_out), (1, N))                       # [1, N*n_out]

    # Pack every parameter into a single f32 slab (one DMA instead of ~10 tiny ones).
    ncols = max(CinH, fs * C1, fs * C2, NO)
    sizes = [("w1", C1), ("w2", C2), ("w3", C3),
             ("b1", C1), ("b2", C2), ("b3", C3),
             ("bc", 1), ("wf", C3 * NW2)]
    off, r = {}, 0
    for name, h in sizes:
        off[name] = r
        r += h
    slab = jnp.zeros((r, ncols), f32)
    slab = slab.at[off["w1"]:off["w1"] + C1, :CinH].set(w1_m)
    slab = slab.at[off["w2"]:off["w2"] + C2, :fs * C1].set(w2_m)
    slab = slab.at[off["w3"]:off["w3"] + C3, :fs * C2].set(w3_m)
    slab = slab.at[off["b1"]:off["b1"] + C1, 0:1].set(b1.reshape(C1, 1).astype(f32))
    slab = slab.at[off["b2"]:off["b2"] + C2, 0:1].set(b2.reshape(C2, 1).astype(f32))
    slab = slab.at[off["b3"]:off["b3"] + C3, 0:1].set(b3.reshape(C3, 1).astype(f32))
    slab = slab.at[off["bc"]:off["bc"] + 1, :NO].set(bcomb_row)
    slab = slab.at[off["wf"]:off["wf"] + C3 * NW2, :NO].set(wfin.reshape(C3 * NW2, NO))

    # ----------------------------------- kernel ------------------------------------
    def kernel(x_ref, p_ref, out_ref, cat2_ref, cat3_ref):
        xv = x_ref[...]                                                    # [CinH, N*W]

        # conv1 + ReLU: one batch-wide [C1, CinH] x [CinH, N*W] matmul.
        w1v = p_ref[off["w1"]:off["w1"] + C1, 0:CinH]
        b1v = p_ref[off["b1"]:off["b1"] + C1, 0:1]
        h1 = jnp.maximum(jnp.dot(w1v, xv, preferred_element_type=jnp.float32) + b1v, 0.0)

        # conv2 + ReLU: stage im2col (fs shifted lane-slices stacked on the channel
        # axis) in VMEM scratch, then ONE [C2, fs*C1] x [fs*C1, NW1] matmul.
        for k in range(fs):
            cat2_ref[k * C1:(k + 1) * C1, :] = h1[:, k:k + NW1]
        w2v = p_ref[off["w2"]:off["w2"] + C2, 0:fs * C1]
        b2v = p_ref[off["b2"]:off["b2"] + C2, 0:1]
        h2 = jnp.maximum(
            jnp.dot(w2v, cat2_ref[...], preferred_element_type=jnp.float32) + b2v, 0.0)

        # conv3 + ReLU: same im2col trick, ONE [C3, fs*C2] x [fs*C2, NW2] matmul.
        for k in range(fs):
            cat3_ref[k * C2:(k + 1) * C2, :] = h2[:, k:k + NW2]
        w3v = p_ref[off["w3"]:off["w3"] + C3, 0:fs * C2]
        b3v = p_ref[off["b3"]:off["b3"] + C3, 0:1]
        h3 = jnp.maximum(
            jnp.dot(w3v, cat3_ref[...], preferred_element_type=jnp.float32) + b3v, 0.0)

        # TODO(synk): nn.Dropout is identity at inference; train-mode dropout not implemented.

        # Flatten + (Linear1 . Linear2) fused: per-channel strided-placement dots
        # accumulated into one [1, N*n_out] row, then a single full store.
        acc = p_ref[off["bc"]:off["bc"] + 1, 0:NO]
        for c in range(C3):
            wf_c = p_ref[off["wf"] + c * NW2:off["wf"] + (c + 1) * NW2, 0:NO]
            acc = acc + jnp.dot(h3[c:c + 1, :], wf_c, preferred_element_type=jnp.float32)
        out_ref[...] = acc

    out_flat = pl.pallas_call(
        kernel,
        out_shape=jax.ShapeDtypeStruct((1, NO), f32),
        in_specs=[pl.BlockSpec(memory_space=pltpu.MemorySpace.VMEM),
                  pl.BlockSpec(memory_space=pltpu.MemorySpace.VMEM)],
        out_specs=pl.BlockSpec(memory_space=pltpu.MemorySpace.VMEM),
        scratch_shapes=[pltpu.VMEM((fs * C1, NW1), f32),
                        pltpu.VMEM((fs * C2, NW2), f32)],
    )(x_flat, slab)
    # TODO(synk): for large serving batches, tile N over a grid with
    # dimension_semantics=("parallel",) so v7x's two TensorCores share the work;
    # at tiny N the no-grid form avoids per-step pipeline overhead.
    return out_flat.reshape(N, n_out).astype(x.dtype)


def _reference_fullnet(x, params):
    """Pure-JAX reference matching torch semantics (NCHW, OIHW, VALID, eval dropout)."""
    w1, b1, w2, b2, w3, b3, wl1, bl1, wl2, bl2 = params

    def conv(h, w, b):
        y = lax.conv_general_dilated(h, w, (1, 1), "VALID",
                                     dimension_numbers=("NCHW", "OIHW", "NCHW"))
        return y + b[None, :, None, None]

    h = jax.nn.relu(conv(x, w1, b1))
    h = jax.nn.relu(conv(h, w2, b2))
    h = jax.nn.relu(conv(h, w3, b3))
    feats = h.reshape(h.shape[0], -1)
    lin1 = feats @ wl1.T + bl1
    return lin1 @ wl2.T + bl2


if __name__ == "__main__":
    # FullNet("net", input_size=(2, 8, 16), n_outputs=3, hlayers=2, filter_size=3,
    #         nchan=4, n_linear=32) -- small shapes consistent with the module.
    N, Cin, H, W = 2, 2, 8, 16
    fs, nchan, n_linear, n_out = 3, 4, 32, 3
    C2 = nchan * 2            # first half of hlayers doubles channels
    C3 = nchan                # second half halves them back
    W2 = W - fs + 1           # 14
    W3 = W2 - fs + 1          # 12
    n_hidden = n_linear // 2  # 16
    lin_size = C3 * 1 * W3    # 48

    key = jax.random.PRNGKey(0)
    keys = jax.random.split(key, 11)
    x = jax.random.normal(keys[0], (N, Cin, H, W), dtype=jnp.float32)
    w1 = jax.random.normal(keys[1], (nchan, Cin, H, 1), dtype=jnp.float32) * 0.2
    b1 = jax.random.normal(keys[2], (nchan,), dtype=jnp.float32) * 0.1
    w2 = jax.random.normal(keys[3], (C2, nchan, 1, fs), dtype=jnp.float32) * 0.2
    b2 = jax.random.normal(keys[4], (C2,), dtype=jnp.float32) * 0.1
    w3 = jax.random.normal(keys[5], (C3, C2, 1, fs), dtype=jnp.float32) * 0.2
    b3 = jax.random.normal(keys[6], (C3,), dtype=jnp.float32) * 0.1
    wl1 = jax.random.normal(keys[7], (n_hidden, lin_size), dtype=jnp.float32) * 0.1
    bl1 = jax.random.normal(keys[8], (n_hidden,), dtype=jnp.float32) * 0.1
    wl2 = jax.random.normal(keys[9], (n_out, n_hidden), dtype=jnp.float32) * 0.1
    bl2 = jax.random.normal(keys[10], (n_out,), dtype=jnp.float32) * 0.1

    params = (w1, b1, w2, b2, w3, b3, wl1, bl1, wl2, bl2)

    out = jax.block_until_ready(fullnet_forward(x, params))
    ref = _reference_fullnet(x, params)
    assert out.shape == (N, n_out), out.shape
    assert jnp.allclose(out, ref, atol=2e-4, rtol=2e-4), float(jnp.max(jnp.abs(out - ref)))

    print("KERNEL_OK")
</pallas_src>

<mosaic_0001>
module attributes {stable_mosaic.version = 11 : i64} {
  func.func @kernel(%arg0: memref<16x32xf32, #tpu.memory_space<vmem>>, %arg1: memref<145x24xf32, #tpu.memory_space<vmem>>, %arg2: memref<1x6xf32, #tpu.memory_space<vmem>>, %arg3: memref<12x30xf32, #tpu.memory_space<vmem>>, %arg4: memref<24x28xf32, #tpu.memory_space<vmem>>) attributes {dimension_semantics = [], scalar_prefetch = 0 : i64, scratch_operands = 2 : i64, tpu.core_type = #tpu.core_type<tc>} {
    %c0 = arith.constant 0 : index
    %c0_0 = arith.constant 0 : index
    %0 = vector.load %arg0[%c0, %c0_0] : memref<16x32xf32, #tpu.memory_space<vmem>>, vector<16x32xf32>
    %c0_1 = arith.constant 0 : index
    %c0_2 = arith.constant 0 : index
    %1 = vector.load %arg1[%c0_1, %c0_2] : memref<145x24xf32, #tpu.memory_space<vmem>>, vector<4x16xf32>
    %c16 = arith.constant 16 : index
    %c0_3 = arith.constant 0 : index
    %2 = vector.load %arg1[%c16, %c0_3] : memref<145x24xf32, #tpu.memory_space<vmem>>, vector<4x1xf32>
    %cst = arith.constant dense<0.000000e+00> : vector<4x32xf32>
    %3 = tpu.matmul %1, %0, %cst {dimension_numbers = #tpu.dot_dimension_numbers<[1], [0], [0], [1], [0, 0, 1, 1], [], []>} : vector<4x16xf32>, vector<16x32xf32>, vector<4x32xf32> -> vector<4x32xf32>
    %4 = vector.broadcast %2 : vector<4x1xf32> to vector<4x32xf32>
    %5 = arith.addf %3, %4 : vector<4x32xf32>
    %cst_4 = arith.constant 0.000000e+00 : f32
    %6 = vector.broadcast %cst_4 : f32 to vector<4x32xf32>
    %7 = arith.maximumf %5, %6 : vector<4x32xf32>
    %8 = vector.extract_strided_slice %7 {offsets = [0, 0], sizes = [4, 30], strides = [1, 1]} : vector<4x32xf32> to vector<4x30xf32>
    %c0_5 = arith.constant 0 : index
    %c0_6 = arith.constant 0 : index
    %9 = vector.load %arg3[%c0_5, %c0_6] : memref<12x30xf32, #tpu.memory_space<vmem>>, vector<4x30xf32>
    tpu.vector_store %arg3[%c0_5, %c0_6], %8 {strides = array<i32>} : memref<12x30xf32, #tpu.memory_space<vmem>>, vector<4x30xf32>,
    %10 = vector.extract_strided_slice %7 {offsets = [0, 1], sizes = [4, 30], strides = [1, 1]} : vector<4x32xf32> to vector<4x30xf32>
    %c4 = arith.constant 4 : index
    %c0_7 = arith.constant 0 : index
    %11 = vector.load %arg3[%c4, %c0_7] : memref<12x30xf32, #tpu.memory_space<vmem>>, vector<4x30xf32>
    tpu.vector_store %arg3[%c4, %c0_7], %10 {strides = array<i32>} : memref<12x30xf32, #tpu.memory_space<vmem>>, vector<4x30xf32>,
    %12 = vector.extract_strided_slice %7 {offsets = [0, 2], sizes = [4, 30], strides = [1, 1]} : vector<4x32xf32> to vector<4x30xf32>
    %c8 = arith.constant 8 : index
    %c0_8 = arith.constant 0 : index
    %13 = vector.load %arg3[%c8, %c0_8] : memref<12x30xf32, #tpu.memory_space<vmem>>, vector<4x30xf32>
    tpu.vector_store %arg3[%c8, %c0_8], %12 {strides = array<i32>} : memref<12x30xf32, #tpu.memory_space<vmem>>, vector<4x30xf32>,
    %c4_9 = arith.constant 4 : index
    %c0_10 = arith.constant 0 : index
    %14 = vector.load %arg1[%c4_9, %c0_10] : memref<145x24xf32, #tpu.memory_space<vmem>>, vector<8x12xf32>
    %c20 = arith.constant 20 : index
    %c0_11 = arith.constant 0 : index
    %15 = vector.load %arg1[%c20, %c0_11] : memref<145x24xf32, #tpu.memory_space<vmem>>, vector<8x1xf32>
    %c0_12 = arith.constant 0 : index
    %c0_13 = arith.constant 0 : index
    %16 = vector.load %arg3[%c0_12, %c0_13] : memref<12x30xf32, #tpu.memory_space<vmem>>, vector<12x30xf32>
    %cst_14 = arith.constant dense<0.000000e+00> : vector<8x30xf32>
    %17 = tpu.matmul %14, %16, %cst_14 {dimension_numbers = #tpu.dot_dimension_numbers<[1], [0], [0], [1], [0, 0, 1, 1], [], []>} : vector<8x12xf32>, vector<12x30xf32>, vector<8x30xf32> -> vector<8x30xf32>
    %18 = vector.broadcast %15 : vector<8x1xf32> to vector<8x30xf32>
    %19 = arith.addf %17, %18 : vector<8x30xf32>
    %cst_15 = arith.constant 0.000000e+00 : f32
    %20 = vector.broadcast %cst_15 : f32 to vector<8x30xf32>
    %21 = arith.maximumf %19, %20 : vector<8x30xf32>
    %22 = vector.extract_strided_slice %21 {offsets = [0, 0], sizes = [8, 28], strides = [1, 1]} : vector<8x30xf32> to vector<8x28xf32>
    %c0_16 = arith.constant 0 : index
    %c0_17 = arith.constant 0 : index
    %23 = vector.load %arg4[%c0_16, %c0_17] : memref<24x28xf32, #tpu.memory_space<vmem>>, vector<8x28xf32>
    tpu.vector_store %arg4[%c0_16, %c0_17], %22 {strides = array<i32>} : memref<24x28xf32, #tpu.memory_space<vmem>>, vector<8x28xf32>,
    %24 = vector.extract_strided_slice %21 {offsets = [0, 1], sizes = [8, 28], strides = [1, 1]} : vector<8x30xf32> to vector<8x28xf32>
    %c8_18 = arith.constant 8 : index
    %c0_19 = arith.constant 0 : index
    %25 = vector.load %arg4[%c8_18, %c0_19] : memref<24x28xf32, #tpu.memory_space<vmem>>, vector<8x28xf32>
    tpu.vector_store %arg4[%c8_18, %c0_19], %24 {strides = array<i32>} : memref<24x28xf32, #tpu.memory_space<vmem>>, vector<8x28xf32>,
    %26 = vector.extract_strided_slice %21 {offsets = [0, 2], sizes = [8, 28], strides = [1, 1]} : vector<8x30xf32> to vector<8x28xf32>
    %c16_20 = arith.constant 16 : index
    %c0_21 = arith.constant 0 : index
    %27 = vector.load %arg4[%c16_20, %c0_21] : memref<24x28xf32, #tpu.memory_space<vmem>>, vector<8x28xf32>
    tpu.vector_store %arg4[%c16_20, %c0_21], %26 {strides = array<i32>} : memref<24x28xf32, #tpu.memory_space<vmem>>, vector<8x28xf32>,
    %c12 = arith.constant 12 : index
    %c0_22 = arith.constant 0 : index
    %28 = vector.load %arg1[%c12, %c0_22] : memref<145x24xf32, #tpu.memory_space<vmem>>, vector<4x24xf32>
    %c28 = arith.constant 28 : index
    %c0_23 = arith.constant 0 : index
    %29 = vector.load %arg1[%c28, %c0_23] : memref<145x24xf32, #tpu.memory_space<vmem>>, vector<4x1xf32>
    %c0_24 = arith.constant 0 : index
    %c0_25 = arith.constant 0 : index
    %30 = vector.load %arg4[%c0_24, %c0_25] : memref<24x28xf32, #tpu.memory_space<vmem>>, vector<24x28xf32>
    %cst_26 = arith.constant dense<0.000000e+00> : vector<4x28xf32>
    %31 = tpu.matmul %28, %30, %cst_26 {dimension_numbers = #tpu.dot_dimension_numbers<[1], [0], [0], [1], [0, 0, 1, 1], [], []>} : vector<4x24xf32>, vector<24x28xf32>, vector<4x28xf32> -> vector<4x28xf32>
    %32 = vector.broadcast %29 : vector<4x1xf32> to vector<4x28xf32>
    %33 = arith.addf %31, %32 : vector<4x28xf32>
    %cst_27 = arith.constant 0.000000e+00 : f32
    %34 = vector.broadcast %cst_27 : f32 to vector<4x28xf32>
    %35 = arith.maximumf %33, %34 : vector<4x28xf32>
    %c32 = arith.constant 32 : index
    %c0_28 = arith.constant 0 : index
    %36 = vector.load %arg1[%c32, %c0_28] : memref<145x24xf32, #tpu.memory_space<vmem>>, vector<1x6xf32>
    %c33 = arith.constant 33 : index
    %c0_29 = arith.constant 0 : index
    %37 = vector.load %arg1[%c33, %c0_29] : memref<145x24xf32, #tpu.memory_space<vmem>>, vector<28x6xf32>
    %38 = vector.extract_strided_slice %35 {offsets = [0, 0], sizes = [1, 28], strides = [1, 1]} : vector<4x28xf32> to vector<1x28xf32>
    %cst_30 = arith.constant dense<0.000000e+00> : vector<1x6xf32>
    %39 = tpu.matmul %38, %37, %cst_30 {dimension_numbers = #tpu.dot_dimension_numbers<[1], [0], [0], [1], [0, 0, 1, 1], [], []>} : vector<1x28xf32>, vector<28x6xf32>, vector<1x6xf32> -> vector<1x6xf32>
    %40 = arith.addf %36, %39 : vector<1x6xf32>
    %c61 = arith.constant 61 : index
    %c0_31 = arith.constant 0 : index
    %41 = vector.load %arg1[%c61, %c0_31] : memref<145x24xf32, #tpu.memory_space<vmem>>, vector<28x6xf32>
    %42 = vector.extract_strided_slice %35 {offsets = [1, 0], sizes = [1, 28], strides = [1, 1]} : vector<4x28xf32> to vector<1x28xf32>
    %cst_32 = arith.constant dense<0.000000e+00> : vector<1x6xf32>
    %43 = tpu.matmul %42, %41, %cst_32 {dimension_numbers = #tpu.dot_dimension_numbers<[1], [0], [0], [1], [0, 0, 1, 1], [], []>} : vector<1x28xf32>, vector<28x6xf32>, vector<1x6xf32> -> vector<1x6xf32>
    %44 = arith.addf %40, %43 : vector<1x6xf32>
    %c89 = arith.constant 89 : index
    %c0_33 = arith.constant 0 : index
    %45 = vector.load %arg1[%c89, %c0_33] : memref<145x24xf32, #tpu.memory_space<vmem>>, vector<28x6xf32>
    %46 = vector.extract_strided_slice %35 {offsets = [2, 0], sizes = [1, 28], strides = [1, 1]} : vector<4x28xf32> to vector<1x28xf32>
    %cst_34 = arith.constant dense<0.000000e+00> : vector<1x6xf32>
    %47 = tpu.matmul %46, %45, %cst_34 {dimension_numbers = #tpu.dot_dimension_numbers<[1], [0], [0], [1], [0, 0, 1, 1], [], []>} : vector<1x28xf32>, vector<28x6xf32>, vector<1x6xf32> -> vector<1x6xf32>
    %48 = arith.addf %44, %47 : vector<1x6xf32>
    %c117 = arith.constant 117 : index
    %c0_35 = arith.constant 0 : index
    %49 = vector.load %arg1[%c117, %c0_35] : memref<145x24xf32, #tpu.memory_space<vmem>>, vector<28x6xf32>
    %50 = vector.extract_strided_slice %35 {offsets = [3, 0], sizes = [1, 28], strides = [1, 1]} : vector<4x28xf32> to vector<1x28xf32>
    %cst_36 = arith.constant dense<0.000000e+00> : vector<1x6xf32>
    %51 = tpu.matmul %50, %49, %cst_36 {dimension_numbers = #tpu.dot_dimension_numbers<[1], [0], [0], [1], [0, 0, 1, 1], [], []>} : vector<1x28xf32>, vector<28x6xf32>, vector<1x6xf32> -> vector<1x6xf32>
    %52 = arith.addf %48, %51 : vector<1x6xf32>
    %c0_37 = arith.constant 0 : index
    %c0_38 = arith.constant 0 : index
    %53 = vector.load %arg2[%c0_37, %c0_38] : memref<1x6xf32, #tpu.memory_space<vmem>>, vector<1x6xf32>
    tpu.vector_store %arg2[%c0_37, %c0_38], %52 {strides = array<i32>} : memref<1x6xf32, #tpu.memory_space<vmem>>, vector<1x6xf32>,
    return
  }
}

</mosaic_0001>

<bundles_post_ra>
// kernel: tpu_custom_call.1
= control target key start
LH: loop header
LB: loop body
LE: loop exit
PB: predicated region body
PF: predicated region fallthrough
CT: control target
= control target key end

     0   :  { %vm21_vm0 = vcmask 130048   ;;  %v328_v3 = vmov 0   ;;  %s437_s0 = inlined_call_operand.vmem [shape: f32[16,32], index: 0, kind: input, shape index: {}]   ;;  %s438_s1 = inlined_call_operand.vmem [shape: f32[145,24], index: 1, kind: input, shape index: {}]   ;;  %s439_s2 = inlined_call_operand.hbm [shape: f32[1,6], index: 2, kind: output, shape index: {}]  }
   0x1   :  { %v13_v0 = vld [vmem:[%s437_s0 + $0x8] sm:$0xff]  ;;  %v12_v1 = vld [vmem:[%s437_s0] sm:$0xff]  ;;  %300 = vset.pattern.permute.xlu0 %v328_v3  ;;  %v15_v4 = vld [vmem:[%s438_s1 + $0x10] sm:$0xf] }
   0x2   :  { %v14_v2 = vld [vmem:[%s438_s1] sm:$0xf]  ;;  %39 = vmatpush.msra.mxu0 %v13_v0 }
   0x3   :  { %7 = vsyncpa [#allocation5], 0  ;;  %18 = vperm.xlu0 %300, %v15_v4   ;;  %301 = vset.pattern.permute.xlu1 %v328_v3  ;;  %vm46_vm1 = vcmask 240640   ;;  %s329_s0 = smov 127   ;;  %s330_s17 = smov 126   ;;  %v58_v10 = vld [vmem:[%s438_s1 + $0x14] sm:$0xff] }
   0x4   :  { %40 = vmatpush.msra.mxu0 %v12_v1  ;;  %v107_v9 = vld [vmem:[%s438_s1 + $0x1c] sm:$0xf]  ;;  %vm70_vm2 = vcmask 1043456   ;;  %v57_v14 = vld [vmem:[%s438_s1 + $0x4] sm:$0xff]  ;;  %vm66_vm3 = vcmask 97280   ;;  %vm95_vm4 = vcmask 228352  }
   0x5   :  { %284 = vmatmul.msk.f32.vlgmr.msra.gmra.mxu0 %vm21_vm0, %v14_v2  ;;  %v145_v20 = vld [vmem:[%s438_s1 + $0x39] sm:$0xf]  ;;  %v106_v25 = vld [vmem:[%s438_s1 + $0xc] sm:$0xf]  ;;  %vm116_vm5 = vcmask 195584   ;;  %v144_v27 = vld [vmem:[%s438_s1 + $0x31] sm:$0xff] }
   0x6   :  { %288 = vmatpush.msk.msra.mxu3 %vm70_vm2, %v145_v20  ;;  %v176_v28 = vld [vmem:[%s438_s1 + $0x55] sm:$0xf]  ;;  %v207_v29 = vld [vmem:[%s438_s1 + $0x71] sm:$0xf]  ;;  %v238_v30 = vld [vmem:[%s438_s1 + $0x8d] sm:$0xf] }
   0x7   :  { %290 = vmatpush.msk.msrb.mxu0 %vm70_vm2, %v176_v28  ;;  %v143_v31 = vld [vmem:[%s438_s1 + $0x29] sm:$0xff]  ;;  %v142_v35 = vld [vmem:[%s438_s1 + $0x21] sm:$0xff]  ;;  %v204_v40 = vld [vmem:[%s438_s1 + $0x59] sm:$0xff]  ;;  %s331_s3 = smov [#allocation4]   ;;  %s275_s7 = sshll.u32 %s439_s2, 4  ;;  %vm266_vm6 = vcmask 40960   ;;  %s276_s7 = int_to_ptr.hbm [resolvable:$true] %s275_s7 }
   0x8   :  { %165 = vmatpush.msra.mxu3 %v144_v27  ;;  %v175_v32 = vld [vmem:[%s438_s1 + $0x4d] sm:$0xff]  ;;  %v237_v34 = vld [vmem:[%s438_s1 + $0x85] sm:$0xff]  ;;  %v236_v38 = vld [vmem:[%s438_s1 + $0x7d] sm:$0xff]  ;;  %s273_s4 = sshll.u32 %s331_s3, 4  ;;  %s274_s4 = int_to_ptr.vmem [resolvable:$true] %s273_s4 }
   0x9   :  { %v206_v33 = vld [vmem:[%s438_s1 + $0x69] sm:$0xff]  ;;  %196 = vmatpush.msrb.mxu0 %v175_v32  ;;  %v205_v37 = vld [vmem:[%s438_s1 + $0x61] sm:$0xff]  ;;  %v235_v41 = vld [vmem:[%s438_s1 + $0x75] sm:$0xff] }
   0xa   :  { %166 = vmatpush.msra.mxu3 %v143_v31  ;;  %v174_v36 = vld [vmem:[%s438_s1 + $0x45] sm:$0xff]  ;;  %v173_v39 = vld [vmem:[%s438_s1 + $0x3d] sm:$0xff] }
   0xb   :  { %197 = vmatpush.msrb.mxu0 %v174_v36  ;;  %v141_v49 = vld [vmem:[%s438_s1 + $0x20] sm:$0x1] }
   0xc   :  { %167 = vmatpush.msra.mxu3 %v142_v35 }
   0xd   :  { %198 = vmatpush.msrb.mxu0 %v173_v39 }
  0x75   :  { %v19_v5 = vpop.permute.xlu0 %18 }
  0x82   :  { %v42_v6 = vpop.f32.mrf.mxu0 }
  0x83   :  { %v43_v7 = vadd.f32 %v42_v6, %v19_v5 }
  0x85   :  { %v45_v8 = vmax.f32 %v43_v7, 0.0 }
  0x87   :  { %49 = vrot.lane.b32.xlu1 %v45_v8, %s329_s0  ;;  %53 = vrot.lane.b32.xlu0 %v45_v8, %s330_s17  ;;  %47 = vst.msk [vmem:[#allocation2] sm:$0xf] %vm46_vm1, %v45_v8 }
  0x8f   :  { %113 = vperm.xlu0 %300, %v107_v9   ;;  %63 = vperm.xlu1 %301, %v58_v10  }
  0xf9   :  { %v50_v11 = vpop.permute.xlu1 %49  ;;  %v54_v12 = vpop.permute.xlu0 %53 }
  0xfa   :  { %52 = vst.msk [vmem:[#allocation2 + $0x4] sm:$0xf] %vm46_vm1, %v50_v11 }
  0xfb   :  { %56 = vst.msk [vmem:[#allocation2 + $0x8] sm:$0xf] %vm46_vm1, %v54_v12 }
 0x101   :  { %v59_v15 = vld [vmem:[#allocation2] sm:$0xff]  ;;  %v64_v16 = vpop.permute.xlu1 %63  ;;  %v114_v42 = vpop.permute.xlu0 %113 }
 0x102   :  { %v60_v13 = vld [vmem:[#allocation2 + $0x8] sm:$0xf] }
 0x103   :  { %285 = vmatpush.msk.msra.mxu1 %vm70_vm2, %v60_v13 }
 0x105   :  { %89 = vmatpush.msra.mxu1 %v59_v15 }
 0x106   :  { %286 = vmatmul.msk.f32.vlgmr.msra.gmra.mxu1 %vm66_vm3, %v57_v14 }
 0x107   :  { %292 = vmatpush.msk.msrb.mxu1 %vm70_vm2, %v207_v29 }
 0x109   :  { %227 = vmatpush.msrb.mxu1 %v206_v33 }
 0x10b   :  { %228 = vmatpush.msrb.mxu1 %v205_v37 }
 0x10d   :  { %229 = vmatpush.msrb.mxu1 %v204_v40 }
 0x183   :  { %v91_v17 = vpop.f32.mrf.mxu1 }
 0x184   :  { %v92_v18 = vadd.f32 %v91_v17, %v64_v16 }
 0x186   :  { %v94_v19 = vmax.f32 %v92_v18, 0.0 }
 0x188   :  { %96 = vst.msk [vmem:[#allocation3] sm:$0xff] %vm95_vm4, %v94_v19  ;;  %102 = vrot.lane.b32.xlu2 %v94_v19, %s330_s17 }
 0x18f   :  { %v108_v26 = vld [vmem:[#allocation3] sm:$0xff] }
 0x190   :  { %98 = vrot.lane.b32.xlu2 %v94_v19, %s329_s0 }
 0x1e2   :  { %v103_v21 = vpop.permute.xlu2 %102 }
 0x1e3   :  { %105 = vst.msk [vmem:[#allocation3 + $0x10] sm:$0xff] %vm95_vm4, %v103_v21 }
 0x1ea   :  { %v99_v22 = vpop.permute.xlu2 %98  ;;  %v110_v23 = vld [vmem:[#allocation3 + $0x10] sm:$0xff] }
 0x1eb   :  { %101 = vst.msk [vmem:[#allocation3 + $0x8] sm:$0xff] %vm95_vm4, %v99_v22  ;;  %133 = vmatpush.msra.mxu2 %v110_v23 }
 0x1f2   :  { %v109_v24 = vld [vmem:[#allocation3 + $0x8] sm:$0xff] }
 0x1f3   :  { %134 = vmatpush.msra.mxu2 %v109_v24 }
 0x1f5   :  { %135 = vmatpush.msra.mxu2 %v108_v26 }
 0x1f6   :  { %287 = vmatmul.msk.f32.vlgmr.msra.gmra.mxu2 %vm116_vm5, %v106_v25 }
 0x1f7   :  { %294 = vmatpush.msk.msrb.mxu2 %vm70_vm2, %v238_v30 }
 0x1f9   :  { %258 = vmatpush.msrb.mxu2 %v237_v34 }
 0x1fb   :  { %259 = vmatpush.msrb.mxu2 %v236_v38 }
 0x1fd   :  { %260 = vmatpush.msrb.mxu2 %v235_v41 }
 0x279   :  { %v137_v43 = vpop.f32.mrf.mxu2 }
 0x27a   :  { %v138_v44 = vadd.f32 %v137_v43, %v114_v42 }
 0x27c   :  { %v140_v45 = vmax.f32 %v138_v44, 0.0 }
 0x27e   :  { %289 = vmatmul.msk.f32.vlgmr.msra.gmra.mxu3 %vm95_vm4, %v140_v45  ;;  %v177_v46 = vrot.slane %v140_v45, 1  ;;  %v208_v47 = vrot.slane %v140_v45, 2  ;;  %v239_v48 = vrot.slane %v140_v45, 3 }
 0x280   :  { %291 = vmatmul.msk.f32.vlgmr.msrb.gmra.mxu0 %vm95_vm4, %v177_v46  ;;  %293 = vmatmul.msk.f32.vlgmr.msrb.gmra.mxu1 %vm95_vm4, %v208_v47 }
 0x281   :  { %295 = vmatmul.msk.f32.vlgmr.msrb.gmra.mxu2 %vm95_vm4, %v239_v48 }
 0x2fd   :  { %v200_v52 = vpop.f32.mrf.mxu0  ;;  %v231_v54 = vpop.f32.mrf.mxu1 }
 0x301   :  { %v169_v50 = vpop.f32.mrf.mxu3 }
 0x302   :  { %v172_v51 = vadd.f32 %v169_v50, %v141_v49 }
 0x304   :  { %v203_v53 = vadd.f32 %v200_v52, %v172_v51  ;;  %v262_v56 = vpop.f32.mrf.mxu2 }
 0x306   :  { %v234_v55 = vadd.f32 %v231_v54, %v203_v53 }
 0x308   :  { %v265_v57 = vadd.f32 %v262_v56, %v234_v55 }
 0x30a   :  { %267 = vst.msk [vmem:[#allocation4] sm:$0x1] %vm266_vm6, %v265_v57 }
 0x30b   :  { %278 = dma.vmem_to_hbm [thread:$0]  %s274_s4, 16, %s276_s7, [#allocation5]  }
 0x30c   :  { %326 = dma.done.wait [#allocation5], 16  }
 0x30d   :  { %327 = vsyncadd [#allocation5], 4294967280 }
 0x30e   :  { %283 = vsyncpa [#allocation5], 1 }

</bundles_post_ra>
